<compile_context>
chip_gen: v7x
topology: tpu7x:2x2x1
jax: 0.10.0
libtpu: 0.0.40
codegen_flags: <defaults>
</compile_context>

<pallas_src>
import functools

import jax
import jax.numpy as jnp
from jax import lax
from jax.experimental import pallas as pl
from jax.experimental.pallas import tpu as pltpu


_DEFAULT_SLAB = 512        # lanes processed per inner-loop step (vreg-resident)
_DEFAULT_TB_MAX = 16384    # max lanes per grid step


def _round_up(a, m):
    return ((a + m - 1) // m) * m


def critic_kernel(xT_ref, wpack_ref, b2_ref, out_ref, *, slab):
    """relu(relu(x @ W1 + b1) @ W2 + b2), batch on the lane axis.

    Shapes:
      xT_ref   : (D, TB)     input tile, batch on lanes (VMEM)
      wpack_ref: (H, D + 2)  packed [W1^T | b1 | w2], resident (VMEM)
      b2_ref   : (1,)        fc2 bias scalar (SMEM)
      out_ref  : (1, TB)     lane-dense output row (VMEM)
    """
    d_in = xT_ref.shape[0]
    tb = out_ref.shape[1]
    n_slabs = tb // slab

    # Resident packed parameters: slice once, outside the slab loop.
    wpack = wpack_ref[...]                                      # (H, D+2)
    w1_cols = [wpack[:, d:d + 1] for d in range(d_in)]          # each (H, 1)
    b1 = wpack[:, d_in:d_in + 1]                                # (H, 1)
    w2 = wpack[:, d_in + 1:d_in + 2]                            # (H, 1)
    b2 = b2_ref[0]

    def body(s, carry):
        start = pl.multiple_of(s * slab, slab)
        # fc1 on the VPU: hT[j, b] = sum_d W1^T[j, d] * x[b, d] + b1[j]
        # (b1 folded into the d = 0 outer-product term).
        hT = w1_cols[0] * xT_ref[0:1, pl.ds(start, slab)] + b1
        for d in range(1, d_in):
            hT = hT + w1_cols[d] * xT_ref[d:d + 1, pl.ds(start, slab)]
        hT = jnp.maximum(hT, 0.0)                               # (H, slab), in vregs
        # fc2: VPU multiply + XLU sublane reduce -> lane-dense (1, slab) row.
        o = jnp.sum(hT * w2, axis=0, keepdims=True) + b2
        out_ref[:, pl.ds(start, slab)] = jnp.maximum(o, 0.0).astype(out_ref.dtype)
        return carry

    lax.fori_loop(0, n_slabs, body, 0, unroll=(n_slabs <= 8))


def _choose_tiling(batch, slab, tb_max):
    """Pick (tile, num_tiles, padded_batch): tiles as large as possible (amortize
    per-grid-step overhead) but >= 2 tiles when the batch is big enough so the
    'parallel' grid can shard across v7x's two TensorCores."""
    b_slab = _round_up(max(batch, 1), slab)
    n_granules = b_slab // slab
    if n_granules <= 2:
        num_tiles = 1
    else:
        num_tiles = min(max(2, pl.cdiv(b_slab, tb_max)), n_granules)
    tb = _round_up(pl.cdiv(b_slab, num_tiles), slab)
    num_tiles = pl.cdiv(b_slab, tb)
    return tb, num_tiles, num_tiles * tb


def pack_critic_params(w1, b1, w2):
    """w1: (D, H), b1: (H,), w2: (H,)  ->  (H, D + 2) packed [W1^T | b1 | w2]."""
    h = w1.shape[1]
    return jnp.concatenate(
        [w1.T.astype(jnp.float32),
         b1.reshape(h, 1).astype(jnp.float32),
         w2.reshape(h, 1).astype(jnp.float32)],
        axis=1)


def _critic_pallas(xT_pad, wpack, b2s, tb, slab):
    d_in, b_pad = xT_pad.shape
    h = wpack.shape[0]
    num_tiles = b_pad // tb
    return pl.pallas_call(
        functools.partial(critic_kernel, slab=slab),
        out_shape=jax.ShapeDtypeStruct((1, b_pad), jnp.float32),
        grid=(num_tiles,),
        in_specs=[
            pl.BlockSpec((d_in, tb), lambda i: (0, i)),          # x tile, batch on lanes
            pl.BlockSpec((h, d_in + 2), lambda i: (0, 0)),       # packed params, resident
            pl.BlockSpec(memory_space=pltpu.MemorySpace.SMEM),   # fc2 bias scalar
        ],
        out_specs=pl.BlockSpec((1, tb), lambda i: (0, i)),       # lane-dense output row
        compiler_params=pltpu.CompilerParams(
            dimension_semantics=("parallel",)),
    )(xT_pad, wpack, b2s)


@functools.partial(jax.jit, static_argnames=("slab", "tb_max"))
def critic_forward(x, w1, b1, w2, b2, *, slab=_DEFAULT_SLAB, tb_max=_DEFAULT_TB_MAX):
    """x: (B, D) -> (B, 1).   w1: (D, H), b1: (H,), w2: (H,), b2: (1,)."""
    batch, _ = x.shape
    tb, _, b_pad = _choose_tiling(batch, slab, tb_max)
    # Single fused pad+transpose pass (batch -> lane axis).  Callers that already hold
    # a feature-major (D, B) activation should call critic_forward_fm and skip it.
    xT = jnp.pad(x.astype(jnp.float32), ((0, b_pad - batch), (0, 0))).T
    wpack = pack_critic_params(w1, b1, w2)
    b2s = b2.reshape((1,)).astype(jnp.float32)
    out = _critic_pallas(xT, wpack, b2s, tb, slab)
    # (1, b_pad) lane-dense result -> (B, 1) to match the PyTorch output layout.
    return out[0, :batch].reshape(batch, 1)


@functools.partial(jax.jit, static_argnames=("slab", "tb_max"))
def critic_forward_fm(xT, w1, b1, w2, b2, *, slab=_DEFAULT_SLAB, tb_max=_DEFAULT_TB_MAX):
    """Feature-major entry: xT is (D, B).  Avoids the wrapper transpose copy."""
    _, batch = xT.shape
    tb, _, b_pad = _choose_tiling(batch, slab, tb_max)
    xT = xT.astype(jnp.float32)
    if b_pad != batch:
        xT = jnp.pad(xT, ((0, 0), (0, b_pad - batch)))
    wpack = pack_critic_params(w1, b1, w2)
    b2s = b2.reshape((1,)).astype(jnp.float32)
    out = _critic_pallas(xT, wpack, b2s, tb, slab)
    return out[0, :batch].reshape(batch, 1)


def init_critic_params(key, input_dim=2, hidden=20):
    """Matches _initialize_weights: weights ~ N(1.0, 1.0), biases = 0."""
    k1, k2 = jax.random.split(key)
    # PyTorch nn.Linear weight is [out, in]; we store w1 as [in, out] = (D, H).
    w1 = 1.0 + jax.random.normal(k1, (input_dim, hidden), dtype=jnp.float32)
    b1 = jnp.zeros((hidden,), dtype=jnp.float32)
    w2 = 1.0 + jax.random.normal(k2, (hidden,), dtype=jnp.float32)
    b2 = jnp.zeros((1,), dtype=jnp.float32)
    return w1, b1, w2, b2


def _reference(x, w1, b1, w2, b2):
    h = jnp.maximum(x @ w1 + b1[None, :], 0.0)
    return jnp.maximum(h @ w2.reshape(-1, 1) + b2, 0.0)


if __name__ == "__main__":
    key = jax.random.PRNGKey(0)
    k_in, k_in2, k_par = jax.random.split(key, 3)

    input_dim = 2
    w1, b1, w2, b2 = init_critic_params(k_par, input_dim=input_dim, hidden=20)

    # Small batch (module is typically called with [1, input_dim]; we batch states).
    batch = 4
    s = jax.random.normal(k_in, (batch, input_dim), dtype=jnp.float32)
    out = jax.block_until_ready(critic_forward(s, w1, b1, w2, b2))
    ref = _reference(s, w1, b1, w2, b2)
    assert out.shape == (batch, 1), out.shape
    assert jnp.allclose(out, ref, atol=1e-5, rtol=1e-5)

    # Feature-major entry point (no wrapper transpose) must match.
    out_fm = jax.block_until_ready(critic_forward_fm(s.T, w1, b1, w2, b2))
    assert out_fm.shape == (batch, 1), out_fm.shape
    assert jnp.allclose(out_fm, ref, atol=1e-5, rtol=1e-5)

    # Modest batch with a small tb_max to exercise the multi-tile "parallel" grid,
    # trailing-tile padding and the multi-slab inner loop.
    batch2 = 3000
    s2 = jax.random.normal(k_in2, (batch2, input_dim), dtype=jnp.float32)
    out2 = jax.block_until_ready(critic_forward(s2, w1, b1, w2, b2, tb_max=1024))
    ref2 = _reference(s2, w1, b1, w2, b2)
    assert out2.shape == (batch2, 1), out2.shape
    assert jnp.allclose(out2, ref2, atol=1e-5, rtol=1e-5)

    print("KERNEL_OK")
</pallas_src>

<mosaic_0001>
module attributes {stable_mosaic.version = 11 : i64} {
  func.func @critic_kernel(%arg0: i32, %arg1: memref<2x512xf32, #tpu.memory_space<vmem>>, %arg2: memref<20x4xf32, #tpu.memory_space<vmem>>, %arg3: memref<1xf32, #tpu.memory_space<smem>>, %arg4: memref<1x512xf32, #tpu.memory_space<vmem>>) attributes {dimension_semantics = [#tpu.dimension_semantics<parallel>], iteration_bounds = array<i64: 1>, scalar_prefetch = 0 : i64, scratch_operands = 0 : i64, tpu.core_type = #tpu.core_type<tc>, window_params = [{transform_indices = @transform_0, window_bounds = array<i64: 2, 512>}, {pipeline_mode = #tpu.pipeline_mode<synchronous>, transform_indices = @transform_1, window_bounds = array<i64: 20, 4>}, {transform_indices = @transform_2, window_bounds = array<i64: 1>}, {transform_indices = @transform_3, window_bounds = array<i64: 1, 512>}]} {
    %c0 = arith.constant 0 : index
    %c0_0 = arith.constant 0 : index
    %0 = vector.load %arg2[%c0, %c0_0] : memref<20x4xf32, #tpu.memory_space<vmem>>, vector<20x4xf32>
    %1 = vector.extract_strided_slice %0 {offsets = [0, 0], sizes = [20, 1], strides = [1, 1]} : vector<20x4xf32> to vector<20x1xf32>
    %2 = vector.extract_strided_slice %0 {offsets = [0, 1], sizes = [20, 1], strides = [1, 1]} : vector<20x4xf32> to vector<20x1xf32>
    %3 = vector.extract_strided_slice %0 {offsets = [0, 2], sizes = [20, 1], strides = [1, 1]} : vector<20x4xf32> to vector<20x1xf32>
    %4 = vector.extract_strided_slice %0 {offsets = [0, 3], sizes = [20, 1], strides = [1, 1]} : vector<20x4xf32> to vector<20x1xf32>
    %c0_1 = arith.constant 0 : index
    %5 = memref.load %arg3[%c0_1] : memref<1xf32, #tpu.memory_space<smem>>
    %c0_i32 = arith.constant 0 : i32
    %c512_i32 = arith.constant 512 : i32
    %6 = arith.muli %c0_i32, %c512_i32 : i32
    %7 = tpu.assume_multiple %6, 512 : i32
    %c0_2 = arith.constant 0 : index
    %8 = arith.index_cast %7 : i32 to index
    %9 = vector.load %arg1[%c0_2, %8] : memref<2x512xf32, #tpu.memory_space<vmem>>, vector<1x512xf32>
    %10 = vector.broadcast %1 : vector<20x1xf32> to vector<20x512xf32>
    %11 = vector.broadcast %9 : vector<1x512xf32> to vector<20x512xf32>
    %12 = arith.mulf %10, %11 : vector<20x512xf32>
    %13 = vector.broadcast %3 : vector<20x1xf32> to vector<20x512xf32>
    %14 = arith.addf %12, %13 : vector<20x512xf32>
    %c1 = arith.constant 1 : index
    %15 = arith.index_cast %7 : i32 to index
    %16 = vector.load %arg1[%c1, %15] : memref<2x512xf32, #tpu.memory_space<vmem>>, vector<1x512xf32>
    %17 = vector.broadcast %2 : vector<20x1xf32> to vector<20x512xf32>
    %18 = vector.broadcast %16 : vector<1x512xf32> to vector<20x512xf32>
    %19 = arith.mulf %17, %18 : vector<20x512xf32>
    %20 = arith.addf %14, %19 : vector<20x512xf32>
    %cst = arith.constant 0.000000e+00 : f32
    %21 = vector.broadcast %cst : f32 to vector<20x512xf32>
    %22 = arith.maximumf %20, %21 : vector<20x512xf32>
    %23 = vector.broadcast %4 : vector<20x1xf32> to vector<20x512xf32>
    %24 = arith.mulf %22, %23 : vector<20x512xf32>
    %cst_3 = arith.constant dense<0.000000e+00> : vector<512xf32>
    %25 = vector.multi_reduction <add>, %24, %cst_3 [0] : vector<20x512xf32> to vector<512xf32>
    %26 = vector.shape_cast %25 : vector<512xf32> to vector<1x512xf32>
    %27 = vector.broadcast %5 : f32 to vector<1x512xf32>
    %28 = arith.addf %26, %27 : vector<1x512xf32>
    %cst_4 = arith.constant 0.000000e+00 : f32
    %29 = vector.broadcast %cst_4 : f32 to vector<1x512xf32>
    %30 = arith.maximumf %28, %29 : vector<1x512xf32>
    %c0_5 = arith.constant 0 : index
    %31 = arith.index_cast %7 : i32 to index
    %32 = vector.load %arg4[%c0_5, %31] : memref<1x512xf32, #tpu.memory_space<vmem>>, vector<1x512xf32>
    tpu.vector_store %arg4[%c0_5, %31], %30 {strides = array<i32>} : memref<1x512xf32, #tpu.memory_space<vmem>>, vector<1x512xf32>,
    %c1_i32 = arith.constant 1 : i32
    return
  }
  func.func @transform_0(%arg0: i32) -> (i32, i32) {
    %c0_i32 = arith.constant 0 : i32
    %c0_i32_0 = arith.constant 0 : i32
    return %c0_i32, %arg0 : i32, i32
  }
  func.func @transform_1(%arg0: i32) -> (i32, i32) {
    %c0_i32 = arith.constant 0 : i32
    %c0_i32_0 = arith.constant 0 : i32
    %c0_i32_1 = arith.constant 0 : i32
    return %c0_i32, %c0_i32_0 : i32, i32
  }
  func.func @transform_2(%arg0: i32) -> i32 {
    %c0_i32 = arith.constant 0 : i32
    %c0_i32_0 = arith.constant 0 : i32
    return %c0_i32 : i32
  }
  func.func @transform_3(%arg0: i32) -> (i32, i32) {
    %c0_i32 = arith.constant 0 : i32
    %c0_i32_0 = arith.constant 0 : i32
    return %c0_i32, %arg0 : i32, i32
  }
}

</mosaic_0001>

<bundles_post_ra>
// kernel: critic_forward.1
= control target key start
LH: loop header
LB: loop body
LE: loop exit
PB: predicated region body
PF: predicated region fallthrough
CT: control target
= control target key end

     0   :  { %v284_v0 = vmov 0   ;;  %v285_v4 = vmov 2   ;;  %v286_v5 = vmov 1   ;;  %v287_v6 = vmov 3   ;;  %s343_s1 = inlined_call_operand.vmem [shape: f32[20,4], index: 1, kind: input, shape index: {}]   ;;  %s344_s0 = inlined_call_operand.vmem [shape: f32[2,512], index: 0, kind: input, shape index: {}]   ;;  %s345_s2 = inlined_call_operand.<no memory space> [shape: f32[1], index: 2, kind: input, shape index: {}]   ;;  %s346_s3 = inlined_call_operand.vmem [shape: f32[1,512], index: 3, kind: output, shape index: {}]  }
   0x1   :  { %278 = vset.pattern.permute.xlu1 %v284_v0  ;;  %277 = vset.pattern.permute.xlu0 %v284_v0  ;;  %v17_v1 = vld [vmem:[%s343_s1 + $0x10] sm:$0xf]  ;;  %v15_v2 = vld [vmem:[%s343_s1] sm:$0xff]  ;;  %v16_v3 = vld [vmem:[%s343_s1 + $0x8] sm:$0xff]  ;;  %v36_v7 = vlaneseq  ;;  %vm188_vm0 = vcmask 1043456  }
   0x2   :  { %32 = vperm.xlu1 %278, %v17_v1   ;;  %22 = vperm.xlu0 %277, %v15_v2   ;;  %v19_v15 = vld [vmem:[%s344_s0] ss:$2 sm:$0xf]  ;;  %v271_v18 = vld [vmem:[%s344_s0 + $0x1] ss:$2 sm:$0xf] }
   0x3   :  { %v319_v8 = vshrl.u32 %v36_v7, 7  ;;  %vm264_vm1 = vcmp.lt.s32.totalorder %v36_v7, 512 }
   0x5   :  { %v38_v11 = vsub.s32 0, %v319_v8  ;;  %v42_v12 = vsub.s32 1, %v319_v8  ;;  %v46_v13 = vsub.s32 2, %v319_v8  ;;  %v50_v14 = vsub.s32 3, %v319_v8 }
   0x6   :  { %279 = vset.pattern.permute.xlu1 %v285_v4  ;;  %27 = vperm.xlu0 %277, %v16_v3  }
   0x7   :  { %69 = vperm.xlu1 %279, %v15_v2   ;;  %v39_v19 = vrot.slane %v19_v15, %v38_v11  ;;  %v43_v20 = vrot.slane %v19_v15, %v42_v12  ;;  %v47_v21 = vrot.slane %v19_v15, %v46_v13  ;;  %v51_v22 = vrot.slane %v19_v15, %v50_v14 }
   0x8   :  { %v110_v23 = vrot.slane %v271_v18, %v38_v11  ;;  %v114_v24 = vrot.slane %v271_v18, %v42_v12  ;;  %v118_v25 = vrot.slane %v271_v18, %v46_v13  ;;  %v122_v26 = vrot.slane %v271_v18, %v50_v14 }
   0xa   :  { %280 = vset.pattern.permute.xlu0 %v285_v4 }
   0xb   :  { %281 = vset.pattern.permute.xlu1 %v286_v5  ;;  %73 = vperm.xlu0 %280, %v16_v3  }
   0xc   :  { %95 = vperm.xlu1 %281, %v15_v2  }
   0xf   :  { %77 = vperm.xlu0 %280, %v17_v1  }
  0x10   :  { %99 = vperm.xlu1 %281, %v16_v3  }
  0x13   :  { %282 = vset.pattern.permute.xlu0 %v287_v6 }
  0x14   :  { %103 = vperm.xlu1 %281, %v17_v1   ;;  %164 = vperm.xlu0 %282, %v15_v2  }
  0x18   :  { %283 = vset.pattern.permute.xlu1 %v287_v6 }
  0x19   :  { %168 = vperm.xlu1 %283, %v16_v3  }
  0x1d   :  { %172 = vperm.xlu1 %283, %v17_v1  }
  0x81   :  { %v33_v9 = vpop.permute.xlu1 %32  ;;  %v23_v10 = vpop.permute.xlu0 %22 }
  0x82   :  { %v56_v27 = vmul.f32 %v39_v19, %v23_v10  ;;  %v57_v28 = vmul.f32 %v43_v20, %v23_v10  ;;  %v58_v29 = vmul.f32 %v47_v21, %v23_v10  ;;  %v59_v30 = vmul.f32 %v51_v22, %v23_v10 }
  0x83   :  { %v64_v32 = vmul.f32 %v39_v19, %v33_v9  ;;  %v65_v33 = vmul.f32 %v43_v20, %v33_v9  ;;  %v66_v34 = vmul.f32 %v47_v21, %v33_v9  ;;  %v67_v35 = vmul.f32 %v51_v22, %v33_v9 }
  0x85   :  { %v28_v17 = vpop.permute.xlu0 %27 }
  0x86   :  { %v70_v16 = vpop.permute.xlu1 %69  ;;  %v60_v37 = vmul.f32 %v39_v19, %v28_v17  ;;  %v61_v38 = vmul.f32 %v43_v20, %v28_v17  ;;  %v62_v39 = vmul.f32 %v47_v21, %v28_v17  ;;  %v63_v40 = vmul.f32 %v51_v22, %v28_v17 }
  0x87   :  { %v80_v45 = vadd.f32 %v70_v16, %v56_v27  ;;  %v81_v46 = vadd.f32 %v70_v16, %v57_v28  ;;  %v82_v47 = vadd.f32 %v70_v16, %v58_v29  ;;  %v83_v48 = vadd.f32 %v70_v16, %v59_v30 }
  0x8a   :  { %v74_v36 = vpop.permute.xlu0 %73 }
  0x8b   :  { %v96_v31 = vpop.permute.xlu1 %95  ;;  %v84_v54 = vadd.f32 %v74_v36, %v60_v37  ;;  %v85_v55 = vadd.f32 %v74_v36, %v61_v38  ;;  %v86_v56 = vadd.f32 %v74_v36, %v62_v39  ;;  %v87_v57 = vadd.f32 %v74_v36, %v63_v40 }
  0x8c   :  { %v127_v41 = vmul.f32 %v110_v23, %v96_v31  ;;  %v128_v42 = vmul.f32 %v114_v24, %v96_v31  ;;  %v129_v43 = vmul.f32 %v118_v25, %v96_v31  ;;  %v130_v44 = vmul.f32 %v122_v26, %v96_v31 }
  0x8e   :  { %v78_v58 = vpop.permute.xlu0 %77  ;;  %v139_v59 = vadd.f32 %v127_v41, %v80_v45  ;;  %v140_v60 = vadd.f32 %v128_v42, %v81_v46  ;;  %v141_v61 = vadd.f32 %v129_v43, %v82_v47  ;;  %v142_v62 = vadd.f32 %v130_v44, %v83_v48 }
  0x8f   :  { %v100_v49 = vpop.permute.xlu1 %99  ;;  %v88_v10 = vadd.f32 %v78_v58, %v64_v32  ;;  %v89_v11 = vadd.f32 %v78_v58, %v65_v33  ;;  %v90_v12 = vadd.f32 %v78_v58, %v66_v34  ;;  %v91_v13 = vadd.f32 %v78_v58, %v67_v35 }
  0x90   :  { %v131_v50 = vmul.f32 %v110_v23, %v100_v49  ;;  %v132_v51 = vmul.f32 %v114_v24, %v100_v49  ;;  %v133_v52 = vmul.f32 %v118_v25, %v100_v49  ;;  %v134_v53 = vmul.f32 %v122_v26, %v100_v49 }
  0x91   :  { %v151_v28 = vmax.f32 %v139_v59, 0.0 }
  0x92   :  { %v143_v63 = vadd.f32 %v131_v50, %v84_v54  ;;  %v144_v0 = vadd.f32 %v132_v51, %v85_v55  ;;  %v145_v1 = vadd.f32 %v133_v52, %v86_v56  ;;  %v146_v2 = vadd.f32 %v134_v53, %v87_v57 }
  0x93   :  { %v104_v3 = vpop.permute.xlu1 %103  ;;  %v165_v27 = vpop.permute.xlu0 %164 }
  0x94   :  { %v135_v4 = vmul.f32 %v110_v23, %v104_v3  ;;  %v136_v5 = vmul.f32 %v114_v24, %v104_v3  ;;  %v137_v6 = vmul.f32 %v118_v25, %v104_v3  ;;  %v138_v9 = vmul.f32 %v122_v26, %v104_v3 }
  0x95   :  { %v155_v19 = vmax.f32 %v143_v63, 0.0  ;;  %v156_v20 = vmax.f32 %v144_v0, 0.0  ;;  %v157_v21 = vmax.f32 %v145_v1, 0.0  ;;  %v158_v22 = vmax.f32 %v146_v2, 0.0 }
  0x96   :  { %v147_v14 = vadd.f32 %v135_v4, %v88_v10  ;;  %v148_v15 = vadd.f32 %v136_v5, %v89_v11  ;;  %v149_v16 = vadd.f32 %v137_v6, %v90_v12  ;;  %v150_v17 = vadd.f32 %v138_v9, %v91_v13 }
  0x97   :  { %v152_v23 = vmax.f32 %v140_v60, 0.0  ;;  %v153_v24 = vmax.f32 %v141_v61, 0.0  ;;  %v154_v25 = vmax.f32 %v142_v62, 0.0  ;;  %v175_v36 = vmul.f32 %v165_v27, %v151_v28 }
  0x98   :  { %v169_v18 = vpop.permute.xlu1 %168  ;;  %v159_v32 = vmax.f32 %v147_v14, 0.0  ;;  %v160_v33 = vmax.f32 %v148_v15, 0.0  ;;  %v161_v34 = vmax.f32 %v149_v16, 0.0  ;;  %v162_v35 = vmax.f32 %v150_v17, 0.0 }
  0x99   :  { %v179_v26 = vmul.f32 %v169_v18, %v155_v19  ;;  %v180_v29 = vmul.f32 %v169_v18, %v156_v20  ;;  %v181_v30 = vmul.f32 %v169_v18, %v157_v21  ;;  %v182_v31 = vmul.f32 %v169_v18, %v158_v22 }
  0x9a   :  { %v176_v37 = vmul.f32 %v165_v27, %v152_v23  ;;  %v177_v38 = vmul.f32 %v165_v27, %v153_v24  ;;  %v178_v39 = vmul.f32 %v165_v27, %v154_v25  ;;  %v288_v5 = vmov 1966171168  }
  0x9b   :  { %v187_v45 = vadd.f32 %v179_v26, %v175_v36  ;;  %v240_v6 = vunpack.c.l.s4 %v288_v5  ;;  %v224_v17 = vstv %s345_s2 }
  0x9c   :  { %v173_v40 = vpop.permute.xlu1 %172  ;;  %v197_v46 = vadd.f32 %v180_v29, %v176_v37  ;;  %v206_v47 = vadd.f32 %v181_v30, %v177_v38  ;;  %v215_v48 = vadd.f32 %v182_v31, %v178_v39 }
  0x9d   :  { %v183_v41 = vmul.f32 %v173_v40, %v159_v32  ;;  %v184_v42 = vmul.f32 %v173_v40, %v160_v33  ;;  %v185_v43 = vmul.f32 %v173_v40, %v161_v34  ;;  %v186_v44 = vmul.f32 %v173_v40, %v162_v35 }
  0x9e   :  { %v241_v18 = vunpack.c.0.s8 %v240_v6 }
  0x9f   :  { %v189_v49 = vsel %vm188_vm0, %v183_v41, 0.0  ;;  %v198_v50 = vsel %vm188_vm0, %v184_v42, 0.0  ;;  %v207_v51 = vsel %vm188_vm0, %v185_v43, 0.0  ;;  %v216_v52 = vsel %vm188_vm0, %v186_v44, 0.0 }
  0xa0   :  { %v190_v53 = vadd.f32 %v189_v49, %v187_v45  ;;  %v199_v54 = vadd.f32 %v198_v50, %v197_v46  ;;  %v208_v55 = vadd.f32 %v207_v51, %v206_v47  ;;  %v217_v56 = vadd.f32 %v216_v52, %v215_v48 }
  0xa1   :  { %v244_v25 = vsub.s32 %v241_v18, %v319_v8 }
  0xa2   :  { %v191_v57 = vrot.slane %v190_v53, 4  ;;  %v200_v58 = vrot.slane %v199_v54, 4  ;;  %v209_v59 = vrot.slane %v208_v55, 4  ;;  %v218_v60 = vrot.slane %v217_v56, 4 }
  0xa4   :  { %v192_v61 = vadd.f32 %v191_v57, %v190_v53  ;;  %v201_v62 = vadd.f32 %v200_v58, %v199_v54  ;;  %v210_v63 = vadd.f32 %v209_v59, %v208_v55  ;;  %v219_v0 = vadd.f32 %v218_v60, %v217_v56 }
  0xa6   :  { %v193_v1 = vrot.slane %v192_v61, 2  ;;  %v202_v2 = vrot.slane %v201_v62, 2  ;;  %v211_v3 = vrot.slane %v210_v63, 2  ;;  %v220_v4 = vrot.slane %v219_v0, 2 }
  0xa8   :  { %v194_v9 = vadd.f32 %v193_v1, %v192_v61  ;;  %v203_v10 = vadd.f32 %v202_v2, %v201_v62  ;;  %v212_v11 = vadd.f32 %v211_v3, %v210_v63  ;;  %v221_v12 = vadd.f32 %v220_v4, %v219_v0 }
  0xaa   :  { %v195_v13 = vrot.slane %v194_v9, 1  ;;  %v204_v14 = vrot.slane %v203_v10, 1  ;;  %v213_v15 = vrot.slane %v212_v11, 1  ;;  %v222_v16 = vrot.slane %v221_v12, 1 }
  0xac   :  { %v196_v19 = vadd.f32 %v195_v13, %v194_v9  ;;  %v205_v20 = vadd.f32 %v204_v14, %v203_v10  ;;  %v214_v21 = vadd.f32 %v213_v15, %v212_v11  ;;  %v223_v22 = vadd.f32 %v222_v16, %v221_v12 }
  0xae   :  { %v225_v27 = vadd.f32 %v224_v17, %v196_v19  ;;  %v226_v28 = vadd.f32 %v224_v17, %v205_v20  ;;  %v227_v23 = vadd.f32 %v224_v17, %v214_v21  ;;  %v228_v24 = vadd.f32 %v224_v17, %v223_v22 }
  0xb0   :  { %v229_v26 = vmax.f32 %v225_v27, 0.0  ;;  %v230_v29 = vmax.f32 %v226_v28, 0.0  ;;  %v231_v30 = vmax.f32 %v227_v23, 0.0  ;;  %v232_v31 = vmax.f32 %v228_v24, 0.0 }
  0xb2   :  { %v237_v32 = vcombine.low %v229_v26, %v230_v29  ;;  %v238_v33 = vcombine.low %v231_v30, %v232_v31 }
  0xb4   :  { %v245_v34 = vrot.slane %v237_v32, %v244_v25  ;;  %v252_v35 = vrot.slane %v238_v33, %v244_v25 }
  0xb6   :  { %v253_v36 = vcombine.low %v245_v34, %v252_v35 }
  0xb8   :  { %v260_v37 = vrot.slane %v253_v36, %v244_v25 }
  0xba   :  { %266 = vst.msk [vmem:[%s346_s3] sm:$0xf] %vm264_vm1, %v260_v37 }

</bundles_post_ra>
